<compile_context>
chip_gen: v5e
topology: v5e:2x2
jax: 0.10.0
libtpu: 0.0.40
codegen_flags: <defaults>
</compile_context>

<pallas_src>
import functools
import math

import jax
import jax.numpy as jnp
import numpy as np
from jax.experimental import pallas as pl
from jax.experimental.pallas import tpu as pltpu


# ----------------------------------------------------------------------------
# Host-side region geometry (static given H, W, L) -- mirrors the PyTorch code
# ----------------------------------------------------------------------------

def _rmac_geometry(H, W, L):
    ovr = 0.4
    steps = np.array([2.0, 3.0, 4.0, 5.0, 6.0, 7.0], dtype=np.float32)
    w = min(W, H)
    b = (max(H, W) - w) / (steps - 1.0)
    idx = int(np.argmin(np.abs((w * w - w * b) / np.float32(w * w) - np.float32(ovr))))
    Wd, Hd = 0, 0
    if H < W:
        Wd = idx + 1
    elif H > W:
        Hd = idx + 1

    levels = []
    for l in L:
        wl = int(math.floor(2.0 * w / (l + 1)))
        if wl == 0:
            # mirrors the `if wl == 0: continue` guard in the reference module
            continue
        wl2 = int(math.floor(wl / 2.0 - 1.0))
        bw = 0.0 if (l + Wd == 1) else (W - wl) / (l + Wd - 1)
        cen_w = np.floor(wl2 + np.arange(l - 1 + Wd + 1, dtype=np.float32)
                         * np.float32(bw)) - wl2
        bh = 0.0 if (l + Hd == 1) else (H - wl) / (l + Hd - 1)
        cen_h = np.floor(wl2 + np.arange(l - 1 + Hd + 1, dtype=np.float32)
                         * np.float32(bh)) - wl2
        cen_w = [int(v) for v in cen_w]
        cen_h = [int(v) for v in cen_h]
        # surface (rather than silently clamp) any out-of-range window centre
        for v in cen_w:
            if not (0 <= v <= W - wl):
                raise ValueError(f"RMAC geometry out of range: j={v}, wl={wl}, W={W}")
        for v in cen_h:
            if not (0 <= v <= H - wl):
                raise ValueError(f"RMAC geometry out of range: i={v}, wl={wl}, H={H}")
        levels.append((wl, cen_h, cen_w))
    return levels


# ----------------------------------------------------------------------------
# Fused Pallas kernels (all levels / regions from one resident channel tile)
# ----------------------------------------------------------------------------

def _region_max_kernel_cl(x_ref, o_ref, *, levels):
    """Channels-last block (N, H, W, TC): channels on the 128-lane axis."""
    r = 0
    for wl, cen_h, cen_w in levels:
        for i in cen_h:
            # Hoisted: reduce the window rows ONCE over the full width
            # (elementwise max across vregs, VPU) and reuse for every column.
            rows = jnp.max(x_ref[:, i:i + wl, :, :], axis=1)      # (N, W, TC)
            for j in cen_w:
                m = jnp.max(rows[:, j:j + wl, :], axis=1)         # (N, TC) sublane reduce
                o_ref[r] = m.astype(o_ref.dtype)
                r += 1


def _region_max_kernel_cf(x_ref, o_ref, *, levels):
    """Channels-first block (N, TC, H, W): W on the 128-lane axis (thin-C path,
    read straight from NCHW -- no transpose pass)."""
    r = 0
    for wl, cen_h, cen_w in levels:
        for i in cen_h:
            rows = jnp.max(x_ref[:, :, i:i + wl, :], axis=2)      # (N, TC, W) sublane reduce
            for j in cen_w:
                m = jnp.max(rows[:, :, j:j + wl], axis=2)         # (N, TC) lane reduce (XLU)
                o_ref[r] = m.astype(o_ref.dtype)
                r += 1


# ----------------------------------------------------------------------------
# Tiling helpers
# ----------------------------------------------------------------------------

def _round_up(v, m):
    return ((v + m - 1) // m) * m


def _pick_channel_tile(c, bytes_per_channel, budget_bytes=16 << 20):
    """Largest 128-aligned channel tile whose DOUBLE-BUFFERED input block fits the
    budget; prefer >= 2 grid steps so both v7x TensorCores get work."""
    if c % 128 != 0:
        return c                         # thin / unaligned channels: single block
    cands = [tc for tc in range(c, 0, -128) if c % tc == 0]
    fitting = [tc for tc in cands if 2 * tc * bytes_per_channel <= budget_bytes]
    if not fitting:
        # TODO(synk): for very large N*H*W also tile the batch / H-strips so the
        # block stays within budget instead of falling back to the minimum tile.
        return 128
    multi = [tc for tc in fitting if c // tc >= 2]
    return multi[0] if multi else fitting[0]


# ----------------------------------------------------------------------------
# Forward pass:  x (N, C, H, W)  ->  (N, C, rows, cols)   (RMAC region pooling)
# ----------------------------------------------------------------------------

@functools.partial(jax.jit, static_argnames=("L",))
def rmac_forward(x_nchw, L=(3,)):
    n, c, h, w = map(int, x_nchw.shape)
    levels = _rmac_geometry(h, w, list(L))
    if not levels:
        raise ValueError("RMAC: all pyramid levels degenerate (wl == 0)")
    num_regions = sum(len(ch) * len(cw) for _, ch, cw in levels)
    itemsize = int(x_nchw.dtype.itemsize)

    channels_last = (c % 128 == 0)
    if channels_last:
        # Wide, lane-aligned channels: channels on the 128-lane axis (best layout
        # for the reductions and lane-dense output stores).
        # TODO(synk): produce NHWC upstream (or fold via allow_input_fusion) to
        # remove this remaining transpose pass entirely.
        x_in = jnp.transpose(x_nchw, (0, 2, 3, 1))                 # (N, H, W, C)
        bytes_per_channel = n * h * _round_up(w, 8) * itemsize
        tc = _pick_channel_tile(c, bytes_per_channel)
        in_block, in_map = (n, h, w, tc), (lambda ci: (0, 0, 0, ci))
        kernel = functools.partial(_region_max_kernel_cl, levels=levels)
    else:
        # Thin / unaligned channels: read NCHW directly -- no transpose pass,
        # spatial W on the lanes instead of a mostly-empty channel axis.
        x_in = x_nchw                                              # (N, C, H, W)
        bytes_per_channel = n * _round_up(h, 8) * _round_up(w, 128) * itemsize
        tc = _pick_channel_tile(c, bytes_per_channel)              # == c here
        in_block, in_map = (n, tc, h, w), (lambda ci: (0, ci, 0, 0))
        kernel = functools.partial(_region_max_kernel_cf, levels=levels)

    nct = c // tc

    flops = 0
    for wl, cen_h, cen_w in levels:
        flops += n * c * len(cen_h) * ((wl - 1) * w + len(cen_w) * (wl - 1))
    cost = pl.CostEstimate(
        flops=int(flops),
        transcendentals=0,
        bytes_accessed=int(n * c * h * w * itemsize + num_regions * n * c * itemsize))

    out = pl.pallas_call(
        kernel,
        out_shape=jax.ShapeDtypeStruct((num_regions, n, c), x_nchw.dtype),
        grid=(nct,),
        in_specs=[pl.BlockSpec(in_block, in_map)],
        out_specs=pl.BlockSpec((num_regions, n, tc), lambda ci: (0, 0, ci)),
        compiler_params=pltpu.CompilerParams(
            dimension_semantics=("parallel",),
            vmem_limit_bytes=32 * 1024 * 1024),
        cost_estimate=cost,
    )(x_in)

    # (R, N, C) -> per-level (N, C, rows, cols), concatenated along rows.
    # Regions were enumerated level-major / i-major / j-minor, matching
    # torch.cat(vecs, dim=2) in the reference module.
    pieces, off = [], 0
    for _, cen_h, cen_w in levels:
        nr, ncols = len(cen_h), len(cen_w)
        blk = out[off:off + nr * ncols].reshape(nr, ncols, n, c)
        pieces.append(jnp.transpose(blk, (2, 3, 0, 1)))
        off += nr * ncols
    return jnp.concatenate(pieces, axis=2)


# ----------------------------------------------------------------------------
# Pure-JAX reference (mirrors the PyTorch module directly) for verification
# ----------------------------------------------------------------------------

def _rmac_reference(x_nchw, L=(3,)):
    h, w = int(x_nchw.shape[2]), int(x_nchw.shape[3])
    rows = []
    for wl, cen_h, cen_w in _rmac_geometry(h, w, list(L)):
        for i in cen_h:
            cols = [jnp.max(x_nchw[:, :, i:i + wl, j:j + wl],
                            axis=(2, 3), keepdims=True)
                    for j in cen_w]
            rows.append(jnp.concatenate(cols, axis=3))
    return jnp.concatenate(rows, axis=2)


# ----------------------------------------------------------------------------
# Main
# ----------------------------------------------------------------------------

if __name__ == "__main__":
    key = jax.random.PRNGKey(0)
    k1, k2, k3 = jax.random.split(key, 3)

    # 1) small square case: (2, 4, 16, 16) -> (2, 4, 3, 3)   (thin-C NCHW path)
    x = jax.random.normal(k1, (2, 4, 16, 16), jnp.float32)
    out = jax.block_until_ready(rmac_forward(x, L=(3,)))
    ref = _rmac_reference(x, L=(3,))
    assert out.shape == (2, 4, 3, 3), out.shape
    assert bool(jnp.allclose(out, ref, atol=1e-6)), "mismatch vs reference (square)"

    # 2) rectangular case exercising the Wd/Hd (aspect-ratio) branch
    xr = jax.random.normal(k2, (2, 4, 12, 16), jnp.float32)
    out_r = jax.block_until_ready(rmac_forward(xr, L=(3,)))
    ref_r = _rmac_reference(xr, L=(3,))
    assert out_r.shape == ref_r.shape, (out_r.shape, ref_r.shape)
    assert bool(jnp.allclose(out_r, ref_r, atol=1e-6)), "mismatch vs reference (rect)"

    # 3) lane-dense, channel-tiled case (ResNet-like C=2048 features):
    #    channels-on-lanes path, 2 parallel channel-tile grid steps.
    xf = jax.random.normal(k3, (2, 2048, 8, 8), jnp.float32)
    out_f = jax.block_until_ready(rmac_forward(xf, L=(3,)))
    ref_f = _rmac_reference(xf, L=(3,))
    assert out_f.shape == (2, 2048, 3, 3), out_f.shape
    assert bool(jnp.allclose(out_f, ref_f, atol=1e-6)), "mismatch vs reference (wide)"

    print("KERNEL_OK")
</pallas_src>

<mosaic_0001>
module attributes {stable_mosaic.version = 11 : i64} {
  func.func @_region_max_kernel_cf(%arg0: i32, %arg1: memref<2x4x16x16xf32, #tpu.memory_space<vmem>>, %arg2: memref<9x2x4xf32, #tpu.memory_space<vmem>>) attributes {dimension_semantics = [#tpu.dimension_semantics<parallel>], iteration_bounds = array<i64: 1>, scalar_prefetch = 0 : i64, scratch_operands = 0 : i64, tpu.core_type = #tpu.core_type<tc>, window_params = [{transform_indices = @transform_0, window_bounds = array<i64: 2, 4, 16, 16>}, {transform_indices = @transform_1, window_bounds = array<i64: 9, 2, 4>}]} {
    %c0 = arith.constant 0 : index
    %c0_0 = arith.constant 0 : index
    %c0_1 = arith.constant 0 : index
    %c0_2 = arith.constant 0 : index
    %0 = vector.load %arg1[%c0, %c0_0, %c0_1, %c0_2] : memref<2x4x16x16xf32, #tpu.memory_space<vmem>>, vector<2x4x8x16xf32>
    %cst = arith.constant dense<0xFF800000> : vector<2x4x16xf32>
    %1 = vector.multi_reduction <maximumf>, %0, %cst [2] : vector<2x4x8x16xf32> to vector<2x4x16xf32>
    %2 = vector.extract_strided_slice %1 {offsets = [0, 0, 0], sizes = [2, 4, 8], strides = [1, 1, 1]} : vector<2x4x16xf32> to vector<2x4x8xf32>
    %cst_3 = arith.constant dense<0xFF800000> : vector<2x4xf32>
    %3 = vector.multi_reduction <maximumf>, %2, %cst_3 [2] : vector<2x4x8xf32> to vector<2x4xf32>
    %c0_4 = arith.constant 0 : index
    %c0_5 = arith.constant 0 : index
    %c0_6 = arith.constant 0 : index
    %4 = vector.load %arg2[%c0_4, %c0_5, %c0_6] : memref<9x2x4xf32, #tpu.memory_space<vmem>>, vector<1x2x4xf32>
    %5 = vector.shape_cast %4 : vector<1x2x4xf32> to vector<2x4xf32>
    %6 = vector.shape_cast %3 : vector<2x4xf32> to vector<1x2x4xf32>
    tpu.vector_store %arg2[%c0_4, %c0_5, %c0_6], %6 {strides = array<i32>} : memref<9x2x4xf32, #tpu.memory_space<vmem>>, vector<1x2x4xf32>,
    %7 = vector.extract_strided_slice %1 {offsets = [0, 0, 4], sizes = [2, 4, 8], strides = [1, 1, 1]} : vector<2x4x16xf32> to vector<2x4x8xf32>
    %cst_7 = arith.constant dense<0xFF800000> : vector<2x4xf32>
    %8 = vector.multi_reduction <maximumf>, %7, %cst_7 [2] : vector<2x4x8xf32> to vector<2x4xf32>
    %c1 = arith.constant 1 : index
    %c0_8 = arith.constant 0 : index
    %c0_9 = arith.constant 0 : index
    %9 = vector.load %arg2[%c1, %c0_8, %c0_9] : memref<9x2x4xf32, #tpu.memory_space<vmem>>, vector<1x2x4xf32>
    %10 = vector.shape_cast %9 : vector<1x2x4xf32> to vector<2x4xf32>
    %11 = vector.shape_cast %8 : vector<2x4xf32> to vector<1x2x4xf32>
    tpu.vector_store %arg2[%c1, %c0_8, %c0_9], %11 {strides = array<i32>} : memref<9x2x4xf32, #tpu.memory_space<vmem>>, vector<1x2x4xf32>,
    %12 = vector.extract_strided_slice %1 {offsets = [0, 0, 8], sizes = [2, 4, 8], strides = [1, 1, 1]} : vector<2x4x16xf32> to vector<2x4x8xf32>
    %cst_10 = arith.constant dense<0xFF800000> : vector<2x4xf32>
    %13 = vector.multi_reduction <maximumf>, %12, %cst_10 [2] : vector<2x4x8xf32> to vector<2x4xf32>
    %c2 = arith.constant 2 : index
    %c0_11 = arith.constant 0 : index
    %c0_12 = arith.constant 0 : index
    %14 = vector.load %arg2[%c2, %c0_11, %c0_12] : memref<9x2x4xf32, #tpu.memory_space<vmem>>, vector<1x2x4xf32>
    %15 = vector.shape_cast %14 : vector<1x2x4xf32> to vector<2x4xf32>
    %16 = vector.shape_cast %13 : vector<2x4xf32> to vector<1x2x4xf32>
    tpu.vector_store %arg2[%c2, %c0_11, %c0_12], %16 {strides = array<i32>} : memref<9x2x4xf32, #tpu.memory_space<vmem>>, vector<1x2x4xf32>,
    %c0_13 = arith.constant 0 : index
    %c0_14 = arith.constant 0 : index
    %c4 = arith.constant 4 : index
    %c0_15 = arith.constant 0 : index
    %17 = vector.load %arg1[%c0_13, %c0_14, %c4, %c0_15] : memref<2x4x16x16xf32, #tpu.memory_space<vmem>>, vector<2x4x8x16xf32>
    %cst_16 = arith.constant dense<0xFF800000> : vector<2x4x16xf32>
    %18 = vector.multi_reduction <maximumf>, %17, %cst_16 [2] : vector<2x4x8x16xf32> to vector<2x4x16xf32>
    %19 = vector.extract_strided_slice %18 {offsets = [0, 0, 0], sizes = [2, 4, 8], strides = [1, 1, 1]} : vector<2x4x16xf32> to vector<2x4x8xf32>
    %cst_17 = arith.constant dense<0xFF800000> : vector<2x4xf32>
    %20 = vector.multi_reduction <maximumf>, %19, %cst_17 [2] : vector<2x4x8xf32> to vector<2x4xf32>
    %c3 = arith.constant 3 : index
    %c0_18 = arith.constant 0 : index
    %c0_19 = arith.constant 0 : index
    %21 = vector.load %arg2[%c3, %c0_18, %c0_19] : memref<9x2x4xf32, #tpu.memory_space<vmem>>, vector<1x2x4xf32>
    %22 = vector.shape_cast %21 : vector<1x2x4xf32> to vector<2x4xf32>
    %23 = vector.shape_cast %20 : vector<2x4xf32> to vector<1x2x4xf32>
    tpu.vector_store %arg2[%c3, %c0_18, %c0_19], %23 {strides = array<i32>} : memref<9x2x4xf32, #tpu.memory_space<vmem>>, vector<1x2x4xf32>,
    %24 = vector.extract_strided_slice %18 {offsets = [0, 0, 4], sizes = [2, 4, 8], strides = [1, 1, 1]} : vector<2x4x16xf32> to vector<2x4x8xf32>
    %cst_20 = arith.constant dense<0xFF800000> : vector<2x4xf32>
    %25 = vector.multi_reduction <maximumf>, %24, %cst_20 [2] : vector<2x4x8xf32> to vector<2x4xf32>
    %c4_21 = arith.constant 4 : index
    %c0_22 = arith.constant 0 : index
    %c0_23 = arith.constant 0 : index
    %26 = vector.load %arg2[%c4_21, %c0_22, %c0_23] : memref<9x2x4xf32, #tpu.memory_space<vmem>>, vector<1x2x4xf32>
    %27 = vector.shape_cast %26 : vector<1x2x4xf32> to vector<2x4xf32>
    %28 = vector.shape_cast %25 : vector<2x4xf32> to vector<1x2x4xf32>
    tpu.vector_store %arg2[%c4_21, %c0_22, %c0_23], %28 {strides = array<i32>} : memref<9x2x4xf32, #tpu.memory_space<vmem>>, vector<1x2x4xf32>,
    %29 = vector.extract_strided_slice %18 {offsets = [0, 0, 8], sizes = [2, 4, 8], strides = [1, 1, 1]} : vector<2x4x16xf32> to vector<2x4x8xf32>
    %cst_24 = arith.constant dense<0xFF800000> : vector<2x4xf32>
    %30 = vector.multi_reduction <maximumf>, %29, %cst_24 [2] : vector<2x4x8xf32> to vector<2x4xf32>
    %c5 = arith.constant 5 : index
    %c0_25 = arith.constant 0 : index
    %c0_26 = arith.constant 0 : index
    %31 = vector.load %arg2[%c5, %c0_25, %c0_26] : memref<9x2x4xf32, #tpu.memory_space<vmem>>, vector<1x2x4xf32>
    %32 = vector.shape_cast %31 : vector<1x2x4xf32> to vector<2x4xf32>
    %33 = vector.shape_cast %30 : vector<2x4xf32> to vector<1x2x4xf32>
    tpu.vector_store %arg2[%c5, %c0_25, %c0_26], %33 {strides = array<i32>} : memref<9x2x4xf32, #tpu.memory_space<vmem>>, vector<1x2x4xf32>,
    %c0_27 = arith.constant 0 : index
    %c0_28 = arith.constant 0 : index
    %c8 = arith.constant 8 : index
    %c0_29 = arith.constant 0 : index
    %34 = vector.load %arg1[%c0_27, %c0_28, %c8, %c0_29] : memref<2x4x16x16xf32, #tpu.memory_space<vmem>>, vector<2x4x8x16xf32>
    %cst_30 = arith.constant dense<0xFF800000> : vector<2x4x16xf32>
    %35 = vector.multi_reduction <maximumf>, %34, %cst_30 [2] : vector<2x4x8x16xf32> to vector<2x4x16xf32>
    %36 = vector.extract_strided_slice %35 {offsets = [0, 0, 0], sizes = [2, 4, 8], strides = [1, 1, 1]} : vector<2x4x16xf32> to vector<2x4x8xf32>
    %cst_31 = arith.constant dense<0xFF800000> : vector<2x4xf32>
    %37 = vector.multi_reduction <maximumf>, %36, %cst_31 [2] : vector<2x4x8xf32> to vector<2x4xf32>
    %c6 = arith.constant 6 : index
    %c0_32 = arith.constant 0 : index
    %c0_33 = arith.constant 0 : index
    %38 = vector.load %arg2[%c6, %c0_32, %c0_33] : memref<9x2x4xf32, #tpu.memory_space<vmem>>, vector<1x2x4xf32>
    %39 = vector.shape_cast %38 : vector<1x2x4xf32> to vector<2x4xf32>
    %40 = vector.shape_cast %37 : vector<2x4xf32> to vector<1x2x4xf32>
    tpu.vector_store %arg2[%c6, %c0_32, %c0_33], %40 {strides = array<i32>} : memref<9x2x4xf32, #tpu.memory_space<vmem>>, vector<1x2x4xf32>,
    %41 = vector.extract_strided_slice %35 {offsets = [0, 0, 4], sizes = [2, 4, 8], strides = [1, 1, 1]} : vector<2x4x16xf32> to vector<2x4x8xf32>
    %cst_34 = arith.constant dense<0xFF800000> : vector<2x4xf32>
    %42 = vector.multi_reduction <maximumf>, %41, %cst_34 [2] : vector<2x4x8xf32> to vector<2x4xf32>
    %c7 = arith.constant 7 : index
    %c0_35 = arith.constant 0 : index
    %c0_36 = arith.constant 0 : index
    %43 = vector.load %arg2[%c7, %c0_35, %c0_36] : memref<9x2x4xf32, #tpu.memory_space<vmem>>, vector<1x2x4xf32>
    %44 = vector.shape_cast %43 : vector<1x2x4xf32> to vector<2x4xf32>
    %45 = vector.shape_cast %42 : vector<2x4xf32> to vector<1x2x4xf32>
    tpu.vector_store %arg2[%c7, %c0_35, %c0_36], %45 {strides = array<i32>} : memref<9x2x4xf32, #tpu.memory_space<vmem>>, vector<1x2x4xf32>,
    %46 = vector.extract_strided_slice %35 {offsets = [0, 0, 8], sizes = [2, 4, 8], strides = [1, 1, 1]} : vector<2x4x16xf32> to vector<2x4x8xf32>
    %cst_37 = arith.constant dense<0xFF800000> : vector<2x4xf32>
    %47 = vector.multi_reduction <maximumf>, %46, %cst_37 [2] : vector<2x4x8xf32> to vector<2x4xf32>
    %c8_38 = arith.constant 8 : index
    %c0_39 = arith.constant 0 : index
    %c0_40 = arith.constant 0 : index
    %48 = vector.load %arg2[%c8_38, %c0_39, %c0_40] : memref<9x2x4xf32, #tpu.memory_space<vmem>>, vector<1x2x4xf32>
    %49 = vector.shape_cast %48 : vector<1x2x4xf32> to vector<2x4xf32>
    %50 = vector.shape_cast %47 : vector<2x4xf32> to vector<1x2x4xf32>
    tpu.vector_store %arg2[%c8_38, %c0_39, %c0_40], %50 {strides = array<i32>} : memref<9x2x4xf32, #tpu.memory_space<vmem>>, vector<1x2x4xf32>,
    return
  }
  func.func @transform_0(%arg0: i32) -> (i32, i32, i32, i32) {
    %c0_i32 = arith.constant 0 : i32
    %c0_i32_0 = arith.constant 0 : i32
    %c0_i32_1 = arith.constant 0 : i32
    %c0_i32_2 = arith.constant 0 : i32
    return %c0_i32, %arg0, %c0_i32_0, %c0_i32_1 : i32, i32, i32, i32
  }
  func.func @transform_1(%arg0: i32) -> (i32, i32, i32) {
    %c0_i32 = arith.constant 0 : i32
    %c0_i32_0 = arith.constant 0 : i32
    %c0_i32_1 = arith.constant 0 : i32
    return %c0_i32, %c0_i32_0, %arg0 : i32, i32, i32
  }
}

</mosaic_0001>

<bundles_post_ra>
// kernel: rmac_forward.1
= control target key start
LH: loop header
LB: loop body
LE: loop exit
PB: predicated region body
PF: predicated region fallthrough
CT: control target
= control target key end

     0   :  { %6 = vsyncpa [#allocation3], 0  ;;  %s577_s0 = inlined_call_operand.hbm [shape: f32[2,4,16,16], index: 0, kind: input, shape index: {}]   ;;  %s578_s1 = inlined_call_operand.hbm [shape: f32[9,2,4], index: 1, kind: output, shape index: {}]  }
   0x1   :  { %7 = vsyncpa [#allocation4], 0  ;;  %s12_s8 = sshll.u32 %s577_s0, 4  ;;  %s477_s9 = smov [#allocation2]   ;;  %s13_s8 = int_to_ptr.hbm [resolvable:$true] %s12_s8 }
   0x2   :  { %s14_s10 = sshll.u32 %s477_s9, 4  ;;  %s478_s11 = smov 128   ;;  %s15_s10 = int_to_ptr.vmem [resolvable:$true] %s14_s10 }
   0x3   :  { %s479_s12 = smov 8  }
   0x4   :  { %20 = dma.hbm_to_vmem [thread:$0]  %s13_s8, 2048, %s15_s10, [#allocation3], %s478_s11, %s478_s11, %s479_s12  }
   0x5   :  { %473 = dma.done.wait [#allocation3], 2048  }
   0x6   :  { %474 = vsyncadd [#allocation3], 4294965248  ;;  %vm33_vm0 = vcmask 130048   ;;  %v25_v0 = vld [vmem:[#allocation2] sm:$0xff]  ;;  %v26_v1 = vld [vmem:[#allocation2 + $0x10] sm:$0xff]  ;;  %vm98_vm1 = vcmask 1041409  }
   0x7   :  { %v27_v2 = vld [vmem:[#allocation2 + $0x20] sm:$0xff]  ;;  %v28_v3 = vld [vmem:[#allocation2 + $0x30] sm:$0xff]  ;;  %v34_v4 = vsel %vm33_vm0, %v25_v0, -inf  ;;  %v41_v5 = vsel %vm33_vm0, %v26_v1, -inf  ;;  %vm100_vm2 = vcmask 1042434   ;;  %vm102_vm3 = vcmask 1043459  }
   0x8   :  { %v48_v6 = vsel %vm33_vm0, %v27_v2, -inf  ;;  %v29_v7 = vld [vmem:[#allocation2 + $0x40] sm:$0xff]  ;;  %v30_v8 = vld [vmem:[#allocation2 + $0x50] sm:$0xff]  ;;  %v35_v9 = vrot.slane %v34_v4, 4  ;;  %v42_v10 = vrot.slane %v41_v5, 4  ;;  %v55_v12 = vsel %vm33_vm0, %v28_v3, -inf }
   0x9   :  { %v49_v11 = vrot.slane %v48_v6, 4  ;;  %v31_v13 = vld [vmem:[#allocation2 + $0x60] sm:$0xff]  ;;  %v32_v14 = vld [vmem:[#allocation2 + $0x70] sm:$0xff]  ;;  %v56_v15 = vrot.slane %v55_v12, 4  ;;  %v62_v16 = vsel %vm33_vm0, %v29_v7, -inf  ;;  %v69_v17 = vsel %vm33_vm0, %v30_v8, -inf }
   0xa   :  { %v76_v18 = vsel %vm33_vm0, %v31_v13, -inf  ;;  %v36_v19 = vmax.f32 %v34_v4, %v35_v9  ;;  %v43_v20 = vmax.f32 %v41_v5, %v42_v10  ;;  %v63_v22 = vrot.slane %v62_v16, 4  ;;  %v156_v51 = vld [vmem:[#allocation2 + $0x4] sm:$0xff]  ;;  %v157_v52 = vld [vmem:[#allocation2 + $0x14] sm:$0xff]  ;;  %s480_s0 = smov [#allocation5]   ;;  %s406_s16 = sshll.u32 %s578_s1, 4  ;;  %s407_s16 = int_to_ptr.hbm [resolvable:$true] %s406_s16 }
   0xb   :  { %v50_v21 = vmax.f32 %v48_v6, %v49_v11  ;;  %v57_v23 = vmax.f32 %v55_v12, %v56_v15  ;;  %v70_v24 = vrot.slane %v69_v17, 4  ;;  %v77_v25 = vrot.slane %v76_v18, 4  ;;  %v158_v61 = vld [vmem:[#allocation2 + $0x24] sm:$0xff]  ;;  %v159_v7 = vld [vmem:[#allocation2 + $0x34] sm:$0xff]  ;;  %s404_s13 = sshll.u32 %s480_s0, 4  ;;  %s481_s17 = smov 32   ;;  %s405_s13 = int_to_ptr.vmem [resolvable:$true] %s404_s13 }
   0xc   :  { %v83_v26 = vsel %vm33_vm0, %v32_v14, -inf  ;;  %v37_v27 = vrot.slane %v36_v19, 2  ;;  %v44_v28 = vrot.slane %v43_v20, 2  ;;  %vm141_vm4 = vcmask 126016   ;;  %v160_v11 = vld [vmem:[#allocation2 + $0x44] sm:$0xff]  ;;  %v161_v12 = vld [vmem:[#allocation2 + $0x54] sm:$0xff] }
   0xd   :  { %v51_v29 = vrot.slane %v50_v21, 2  ;;  %vm126_vm5 = vcmask 93216   ;;  %vm109_vm6 = vcmask 60416   ;;  %v64_v30 = vmax.f32 %v62_v16, %v63_v22  ;;  %s482_s18 = smov 2  }
   0xe   :  { %v58_v31 = vrot.slane %v57_v23, 2  ;;  %v71_v32 = vmax.f32 %v69_v17, %v70_v24  ;;  %v78_v33 = vmax.f32 %v76_v18, %v77_v25  ;;  %v84_v34 = vrot.slane %v83_v26, 4 }
   0xf   :  { %v38_v35 = vmax.f32 %v36_v19, %v37_v27  ;;  %v45_v36 = vmax.f32 %v43_v20, %v44_v28  ;;  %v52_v37 = vmax.f32 %v50_v21, %v51_v29  ;;  %v65_v38 = vrot.slane %v64_v30, 2  ;;  %v162_v29 = vld [vmem:[#allocation2 + $0x64] sm:$0xff] }
  0x10   :  { %v59_v39 = vmax.f32 %v57_v23, %v58_v31  ;;  %v72_v40 = vrot.slane %v71_v32, 2  ;;  %v79_v41 = vrot.slane %v78_v33, 2  ;;  %v85_v42 = vmax.f32 %v83_v26, %v84_v34 }
  0x11   :  { %v39_v43 = vrot.slane %v38_v35, 1  ;;  %v46_v44 = vrot.slane %v45_v36, 1  ;;  %v53_v45 = vrot.slane %v52_v37, 1  ;;  %v66_v46 = vmax.f32 %v64_v30, %v65_v38  ;;  %v163_v30 = vld [vmem:[#allocation2 + $0x74] sm:$0xff] }
  0x12   :  { %v60_v47 = vrot.slane %v59_v39, 1  ;;  %v73_v48 = vmax.f32 %v71_v32, %v72_v40  ;;  %v80_v49 = vmax.f32 %v78_v33, %v79_v41  ;;  %v86_v50 = vrot.slane %v85_v42, 2 }
  0x13   :  { %v40_v53 = vmax.f32 %v38_v35, %v39_v43  ;;  %v47_v54 = vmax.f32 %v45_v36, %v46_v44  ;;  %v54_v55 = vmax.f32 %v52_v37, %v53_v45  ;;  %v67_v56 = vrot.slane %v66_v46, 1 }
  0x14   :  { %v61_v57 = vmax.f32 %v59_v39, %v60_v47  ;;  %v74_v58 = vrot.slane %v73_v48, 1  ;;  %v81_v59 = vrot.slane %v80_v49, 1  ;;  %v87_v60 = vmax.f32 %v85_v42, %v86_v50 }
  0x15   :  { %v99_v62 = vsel %vm98_vm1, %v47_v54, %v40_v53  ;;  %v68_v63 = vmax.f32 %v66_v46, %v67_v56  ;;  %v164_v0 = vsel %vm33_vm0, %v156_v51, -inf  ;;  %v171_v1 = vsel %vm33_vm0, %v157_v52, -inf  ;;  %v278_v51 = vld [vmem:[#allocation2 + $0x8] sm:$0xff] }
  0x16   :  { %v101_v2 = vsel %vm100_vm2, %v54_v55, %v99_v62  ;;  %v75_v3 = vmax.f32 %v73_v48, %v74_v58  ;;  %v82_v4 = vmax.f32 %v80_v49, %v81_v59  ;;  %v88_v5 = vrot.slane %v87_v60, 1 }
  0x17   :  { %v103_v6 = vsel %vm102_vm3, %v61_v57, %v101_v2  ;;  %v165_v8 = vrot.slane %v164_v0, 4  ;;  %v172_v9 = vrot.slane %v171_v1, 4  ;;  %v178_v10 = vsel %vm33_vm0, %v158_v61, -inf }
  0x18   :  { %v142_v13 = vsel %vm141_vm4, %v103_v6, -inf  ;;  %v127_v14 = vsel %vm126_vm5, %v103_v6, -inf  ;;  %v110_v15 = vsel %vm109_vm6, %v103_v6, -inf  ;;  %v89_v16 = vmax.f32 %v87_v60, %v88_v5  ;;  %v279_v60 = vld [vmem:[#allocation2 + $0x18] sm:$0xff]  ;;  %v280_v5 = vld [vmem:[#allocation2 + $0x28] sm:$0xff] }
  0x19   :  { %143 = vmax.xlane.f32.xlu2 %v142_v13  ;;  %128 = vmax.xlane.f32.xlu1 %v127_v14  ;;  %v104_v17 = vsel %vm98_vm1, %v75_v3, %v68_v63  ;;  %v166_v18 = vmax.f32 %v164_v0, %v165_v8  ;;  %v173_v19 = vmax.f32 %v171_v1, %v172_v9  ;;  %v179_v20 = vrot.slane %v178_v10, 4 }
  0x1a   :  { %111 = vmax.xlane.f32.xlu0 %v110_v15  ;;  %v105_v21 = vsel %vm100_vm2, %v82_v4, %v104_v17  ;;  %v185_v22 = vsel %vm33_vm0, %v159_v7, -inf  ;;  %v192_v23 = vsel %vm33_vm0, %v160_v11, -inf  ;;  %v199_v24 = vsel %vm33_vm0, %v161_v12, -inf }
  0x1b   :  { %v106_v25 = vsel %vm102_vm3, %v89_v16, %v105_v21  ;;  %v167_v26 = vrot.slane %v166_v18, 2  ;;  %v174_v27 = vrot.slane %v173_v19, 2  ;;  %v180_v28 = vmax.f32 %v178_v10, %v179_v20 }
  0x1c   :  { %v145_v31 = vsel %vm141_vm4, %v106_v25, -inf  ;;  %v130_v32 = vsel %vm126_vm5, %v106_v25, -inf  ;;  %v113_v33 = vsel %vm109_vm6, %v106_v25, -inf  ;;  %v186_v34 = vrot.slane %v185_v22, 4 }
  0x1d   :  { %v168_v35 = vmax.f32 %v166_v18, %v167_v26  ;;  %v175_v36 = vmax.f32 %v173_v19, %v174_v27  ;;  %v181_v37 = vrot.slane %v180_v28, 2  ;;  %v193_v38 = vrot.slane %v192_v23, 4 }
  0x1e   :  { %v187_v39 = vmax.f32 %v185_v22, %v186_v34  ;;  %v200_v40 = vrot.slane %v199_v24, 4  ;;  %v206_v41 = vsel %vm33_vm0, %v162_v29, -inf  ;;  %v213_v42 = vsel %vm33_vm0, %v163_v30, -inf  ;;  %v281_v22 = vld [vmem:[#allocation2 + $0x38] sm:$0xff] }
  0x1f   :  { %v169_v43 = vrot.slane %v168_v35, 1  ;;  %v176_v44 = vrot.slane %v175_v36, 1  ;;  %v182_v45 = vmax.f32 %v180_v28, %v181_v37  ;;  %v194_v46 = vmax.f32 %v192_v23, %v193_v38  ;;  %v282_v23 = vld [vmem:[#allocation2 + $0x48] sm:$0xff] }
  0x20   :  { %v188_v47 = vrot.slane %v187_v39, 2  ;;  %v201_v48 = vmax.f32 %v199_v24, %v200_v40  ;;  %v207_v49 = vrot.slane %v206_v41, 4  ;;  %v214_v50 = vrot.slane %v213_v42, 4 }
  0x21   :  { %146 = vmax.xlane.f32.xlu2 %v145_v31  ;;  %131 = vmax.xlane.f32.xlu1 %v130_v32  ;;  %v170_v52 = vmax.f32 %v168_v35, %v169_v43  ;;  %v177_v53 = vmax.f32 %v175_v36, %v176_v44  ;;  %v183_v54 = vrot.slane %v182_v45, 1  ;;  %v195_v55 = vrot.slane %v194_v46, 2  ;;  %v283_v31 = vld [vmem:[#allocation2 + $0x58] sm:$0xff]  ;;  %v284_v43 = vld [vmem:[#allocation2 + $0x68] sm:$0xff] }
  0x22   :  { %114 = vmax.xlane.f32.xlu0 %v113_v33  ;;  %v189_v56 = vmax.f32 %v187_v39, %v188_v47  ;;  %v202_v57 = vrot.slane %v201_v48, 2  ;;  %v208_v58 = vmax.f32 %v206_v41, %v207_v49  ;;  %v215_v59 = vmax.f32 %v213_v42, %v214_v50  ;;  %v285_v44 = vld [vmem:[#allocation2 + $0x78] sm:$0xff] }
  0x23   :  { %v184_v61 = vmax.f32 %v182_v45, %v183_v54  ;;  %v228_v62 = vsel %vm98_vm1, %v177_v53, %v170_v52  ;;  %v196_v63 = vmax.f32 %v194_v46, %v195_v55  ;;  %v286_v0 = vsel %vm33_vm0, %v278_v51, -inf }
  0x24   :  { %v190_v1 = vrot.slane %v189_v56, 1  ;;  %v203_v2 = vmax.f32 %v201_v48, %v202_v57  ;;  %v209_v3 = vrot.slane %v208_v58, 2  ;;  %v216_v4 = vrot.slane %v215_v59, 2 }
  0x25   :  { %v229_v6 = vsel %vm100_vm2, %v184_v61, %v228_v62  ;;  %v197_v7 = vrot.slane %v196_v63, 1  ;;  %v287_v8 = vrot.slane %v286_v0, 4  ;;  %v293_v9 = vsel %vm33_vm0, %v279_v60, -inf }
  0x26   :  { %v191_v10 = vmax.f32 %v189_v56, %v190_v1  ;;  %v204_v11 = vrot.slane %v203_v2, 1  ;;  %v210_v12 = vmax.f32 %v208_v58, %v209_v3  ;;  %v217_v13 = vmax.f32 %v215_v59, %v216_v4 }
  0x27   :  { %v198_v14 = vmax.f32 %v196_v63, %v197_v7  ;;  %v288_v15 = vmax.f32 %v286_v0, %v287_v8  ;;  %v294_v16 = vrot.slane %v293_v9, 4  ;;  %v300_v17 = vsel %vm33_vm0, %v280_v5, -inf }
  0x28   :  { %v230_v18 = vsel %vm102_vm3, %v191_v10, %v229_v6  ;;  %v205_v19 = vmax.f32 %v203_v2, %v204_v11  ;;  %v211_v20 = vrot.slane %v210_v12, 1  ;;  %v218_v21 = vrot.slane %v217_v13, 1 }
  0x29   :  { %v250_v24 = vsel %vm126_vm5, %v230_v18, -inf  ;;  %v236_v25 = vsel %vm109_vm6, %v230_v18, -inf  ;;  %v289_v26 = vrot.slane %v288_v15, 2  ;;  %v301_v30 = vrot.slane %v300_v17, 4 }
  0x2a   :  { %251 = vmax.xlane.f32.xlu2 %v250_v24  ;;  %v212_v27 = vmax.f32 %v210_v12, %v211_v20  ;;  %v219_v28 = vmax.f32 %v217_v13, %v218_v21  ;;  %v231_v29 = vsel %vm98_vm1, %v205_v19, %v198_v14  ;;  %237 = vmax.xlane.f32.xlu0 %v236_v25  ;;  %v307_v34 = vsel %vm33_vm0, %v281_v22, -inf }
  0x2b   :  { %v290_v32 = vmax.f32 %v288_v15, %v289_v26  ;;  %v295_v33 = vmax.f32 %v293_v9, %v294_v16  ;;  %v314_v35 = vsel %vm33_vm0, %v282_v23, -inf  ;;  %v302_v37 = vmax.f32 %v300_v17, %v301_v30 }
  0x2c   :  { %v232_v36 = vsel %vm100_vm2, %v212_v27, %v231_v29  ;;  %v308_v38 = vrot.slane %v307_v34, 4  ;;  %v315_v39 = vrot.slane %v314_v35, 4  ;;  %v321_v45 = vsel %vm33_vm0, %v283_v31, -inf }
  0x2d   :  { %v233_v40 = vsel %vm102_vm3, %v219_v28, %v232_v36  ;;  %v291_v41 = vrot.slane %v290_v32, 1  ;;  %v296_v42 = vrot.slane %v295_v33, 2  ;;  %v303_v49 = vrot.slane %v302_v37, 2 }
  0x2e   :  { %v239_v46 = vsel %vm109_vm6, %v233_v40, -inf  ;;  %v267_v47 = vsel %vm141_vm4, %v233_v40, -inf  ;;  %v253_v48 = vsel %vm126_vm5, %v233_v40, -inf  ;;  %v309_v52 = vmax.f32 %v307_v34, %v308_v38 }
  0x2f   :  { %240 = vmax.xlane.f32.xlu1 %v239_v46  ;;  %v292_v50 = vmax.f32 %v290_v32, %v291_v41  ;;  %v297_v51 = vmax.f32 %v295_v33, %v296_v42  ;;  %v316_v53 = vmax.f32 %v314_v35, %v315_v39  ;;  %v304_v54 = vmax.f32 %v302_v37, %v303_v49 }
  0x30   :  { %v322_v55 = vrot.slane %v321_v45, 4  ;;  %v328_v56 = vsel %vm33_vm0, %v284_v43, -inf  ;;  %v335_v57 = vsel %vm33_vm0, %v285_v44, -inf  ;;  %v310_v59 = vrot.slane %v309_v52, 2 }
  0x31   :  { %v298_v58 = vrot.slane %v297_v51, 1  ;;  %v317_v60 = vrot.slane %v316_v53, 2  ;;  %v329_v61 = vrot.slane %v328_v56, 4  ;;  %v305_v62 = vrot.slane %v304_v54, 1 }
  0x32   :  { %268 = vmax.xlane.f32.xlu2 %v267_v47  ;;  %254 = vmax.xlane.f32.xlu0 %v253_v48  ;;  %v323_v63 = vmax.f32 %v321_v45, %v322_v55  ;;  %v336_v0 = vrot.slane %v335_v57, 4  ;;  %v311_v2 = vmax.f32 %v309_v52, %v310_v59  ;;  %v264_v5 = vsel %vm141_vm4, %v230_v18, -inf }
  0x33   :  { %v299_v1 = vmax.f32 %v297_v51, %v298_v58  ;;  %v318_v3 = vmax.f32 %v316_v53, %v317_v60  ;;  %v330_v4 = vmax.f32 %v328_v56, %v329_v61  ;;  %v306_v6 = vmax.f32 %v304_v54, %v305_v62 }
  0x34   :  { %v324_v7 = vrot.slane %v323_v63, 2  ;;  %v337_v8 = vmax.f32 %v335_v57, %v336_v0  ;;  %v312_v9 = vrot.slane %v311_v2, 1  ;;  %v118_v38 = vlaneseq }
  0x35   :  { %v350_v10 = vsel %vm98_vm1, %v299_v1, %v292_v50  ;;  %v319_v11 = vrot.slane %v318_v3, 1  ;;  %v331_v12 = vrot.slane %v330_v4, 2  ;;  %vm124_vm7 = vcmask 25600  }
  0x36   :  { %v351_v13 = vsel %vm100_vm2, %v306_v6, %v350_v10  ;;  %v325_v14 = vmax.f32 %v323_v63, %v324_v7  ;;  %v338_v15 = vrot.slane %v337_v8, 2  ;;  %v313_v16 = vmax.f32 %v311_v2, %v312_v9 }
  0x37   :  { %265 = vmax.xlane.f32.xlu1 %v264_v5  ;;  %v332_v17 = vmax.f32 %v330_v4, %v331_v12  ;;  %v320_v19 = vmax.f32 %v318_v3, %v319_v11  ;;  %v119_v40 = vand.u32 127, %v118_v38 }
  0x38   :  { %v326_v20 = vrot.slane %v325_v14, 1  ;;  %v339_v21 = vmax.f32 %v337_v8, %v338_v15  ;;  %v352_v18 = vsel %vm102_vm3, %v313_v16, %v351_v13 }
  0x39   :  { %v333_v22 = vrot.slane %v332_v17, 1  ;;  %v372_v23 = vsel %vm126_vm5, %v352_v18, -inf  ;;  %v358_v26 = vsel %vm109_vm6, %v352_v18, -inf  ;;  %v386_v35 = vsel %vm141_vm4, %v352_v18, -inf }
  0x3a   :  { %v327_v24 = vmax.f32 %v325_v14, %v326_v20  ;;  %v340_v25 = vrot.slane %v339_v21, 1  ;;  %373 = vmax.xlane.f32.xlu2 %v372_v23  ;;  %359 = vmax.xlane.f32.xlu0 %v358_v26 }
  0x3b   :  { %v334_v27 = vmax.f32 %v332_v17, %v333_v22 }
  0x3c   :  { %v341_v28 = vmax.f32 %v339_v21, %v340_v25  ;;  %v353_v29 = vsel %vm98_vm1, %v327_v24, %v320_v19 }
  0x3d   :  { %v354_v30 = vsel %vm100_vm2, %v334_v27, %v353_v29 }
  0x3e   :  { %v355_v31 = vsel %vm102_vm3, %v341_v28, %v354_v30 }
  0x3f   :  { %v361_v32 = vsel %vm109_vm6, %v355_v31, -inf  ;;  %v389_v33 = vsel %vm141_vm4, %v355_v31, -inf  ;;  %v375_v34 = vsel %vm126_vm5, %v355_v31, -inf }
  0x40   :  { %362 = vmax.xlane.f32.xlu1 %v361_v32 }
  0x42   :  { %390 = vmax.xlane.f32.xlu2 %v389_v33  ;;  %376 = vmax.xlane.f32.xlu0 %v375_v34 }
  0x48   :  { %387 = vmax.xlane.f32.xlu1 %v386_v35 }
  0x8c   :  { %v144_v36 = vpop.xlane.xlu2 %143  ;;  %v129_v37 = vpop.xlane.xlu1 %128 }
  0x8d   :  { %v112_v39 = vpop.xlane.xlu0 %111  ;;  %v150_v43 = vperm.slane %v144_v36, %v119_v40  ;;  %v135_v44 = vperm.slane %v129_v37, %v119_v40 }
  0x8e   :  { %v120_v48 = vperm.slane %v112_v39, %v119_v40 }
  0x94   :  { %v147_v41 = vpop.xlane.xlu2 %146  ;;  %v132_v42 = vpop.xlane.xlu1 %131 }
  0x95   :  { %v151_v45 = vperm.slane %v147_v41, %v119_v40  ;;  %v136_v46 = vperm.slane %v132_v42, %v119_v40  ;;  %v115_v47 = vpop.xlane.xlu0 %114 }
  0x96   :  { %v121_v49 = vperm.slane %v115_v47, %v119_v40 }
  0x97   :  { %v152_v50 = vsel %vm98_vm1, %v151_v45, %v150_v43  ;;  %v137_v51 = vsel %vm98_vm1, %v136_v46, %v135_v44 }
  0x98   :  { %155 = vst.msk [vmem:[#allocation5 + $0x4] sm:$0x3] %vm124_vm7, %v152_v50  ;;  %v122_v52 = vsel %vm98_vm1, %v121_v49, %v120_v48 }
  0x99   :  { %140 = vst.msk [vmem:[#allocation5 + $0x2] sm:$0x3] %vm124_vm7, %v137_v51 }
  0x9a   :  { %125 = vst.msk [vmem:[#allocation5] sm:$0x3] %vm124_vm7, %v122_v52 }
  0x9d   :  { %v252_v53 = vpop.xlane.xlu2 %251  ;;  %v238_v54 = vpop.xlane.xlu0 %237 }
  0x9e   :  { %v244_v55 = vperm.slane %v238_v54, %v119_v40  ;;  %v258_v61 = vperm.slane %v252_v53, %v119_v40 }
  0xa2   :  { %v241_v56 = vpop.xlane.xlu1 %240 }
  0xa3   :  { %v245_v57 = vperm.slane %v241_v56, %v119_v40 }
  0xa5   :  { %v246_v58 = vsel %vm98_vm1, %v245_v57, %v244_v55  ;;  %v269_v59 = vpop.xlane.xlu2 %268  ;;  %v255_v60 = vpop.xlane.xlu0 %254 }
  0xa6   :  { %249 = vst.msk [vmem:[#allocation5 + $0x6] sm:$0x3] %vm124_vm7, %v246_v58  ;;  %v259_v62 = vperm.slane %v255_v60, %v119_v40  ;;  %v273_v0 = vperm.slane %v269_v59, %v119_v40 }
  0xa8   :  { %v260_v63 = vsel %vm98_vm1, %v259_v62, %v258_v61 }
  0xa9   :  { %263 = vst.msk [vmem:[#allocation5 + $0x8] sm:$0x3] %vm124_vm7, %v260_v63 }
  0xaa   :  { %v266_v1 = vpop.xlane.xlu1 %265 }
  0xab   :  { %v272_v2 = vperm.slane %v266_v1, %v119_v40 }
  0xad   :  { %v274_v3 = vsel %vm98_vm1, %v273_v0, %v272_v2  ;;  %v374_v4 = vpop.xlane.xlu2 %373  ;;  %v360_v5 = vpop.xlane.xlu0 %359 }
  0xae   :  { %277 = vst.msk [vmem:[#allocation5 + $0xa] sm:$0x3] %vm124_vm7, %v274_v3  ;;  %v366_v6 = vperm.slane %v360_v5, %v119_v40  ;;  %v380_v11 = vperm.slane %v374_v4, %v119_v40 }
  0xb3   :  { %v363_v7 = vpop.xlane.xlu1 %362 }
  0xb4   :  { %v367_v8 = vperm.slane %v363_v7, %v119_v40 }
  0xb5   :  { %v377_v10 = vpop.xlane.xlu0 %376  ;;  %v391_v12 = vpop.xlane.xlu2 %390 }
  0xb6   :  { %v368_v9 = vsel %vm98_vm1, %v367_v8, %v366_v6  ;;  %v381_v13 = vperm.slane %v377_v10, %v119_v40  ;;  %v395_v15 = vperm.slane %v391_v12, %v119_v40 }
  0xb7   :  { %371 = vst.msk [vmem:[#allocation5 + $0xc] sm:$0x3] %vm124_vm7, %v368_v9 }
  0xb8   :  { %v382_v14 = vsel %vm98_vm1, %v381_v13, %v380_v11 }
  0xb9   :  { %385 = vst.msk [vmem:[#allocation5 + $0xe] sm:$0x3] %vm124_vm7, %v382_v14 }
  0xbb   :  { %v388_v16 = vpop.xlane.xlu1 %387 }
  0xbc   :  { %v394_v17 = vperm.slane %v388_v16, %v119_v40 }
  0xbe   :  { %v396_v19 = vsel %vm98_vm1, %v395_v15, %v394_v17 }
  0xbf   :  { %399 = vst.msk [vmem:[#allocation5 + $0x10] sm:$0x3] %vm124_vm7, %v396_v19 }
  0xc0   :  { %412 = dma.vmem_to_hbm [thread:$0]  %s405_s13, 288, %s407_s16, [#allocation4], %s481_s17, %s481_s17, %s482_s18  }
  0xc1   :  { %475 = dma.done.wait [#allocation4], 288  }
  0xc2   :  { %476 = vsyncadd [#allocation4], 4294967008 }
  0xc3   :  { %417 = vsyncpa [#allocation3], 1 }
  0xc4   :  { %418 = vsyncpa [#allocation4], 1 }

</bundles_post_ra>
